<compile_context>
chip_gen: v7x
topology: tpu7x:2x2x1
jax: 0.10.0
libtpu: 0.0.40
codegen_flags: <defaults>
</compile_context>

<pallas_src>
import functools

import jax
import jax.numpy as jnp
from jax.experimental import pallas as pl
from jax.experimental.pallas import tpu as pltpu


def _round_up(x, m):
    return ((x + m - 1) // m) * m


def _resident_block_spec(shape, index_map):
    """BlockSpec for a per-call-resident operand (constant index_map).

    Single-buffered when pipeline_mode is supported (halves weight VMEM);
    falls back to a plain BlockSpec if this JAX version lacks pipeline_mode.
    """
    try:
        return pl.BlockSpec(shape, index_map, pipeline_mode=pl.Buffered(1))
    except TypeError:
        return pl.BlockSpec(shape, index_map)


# ----------------------------- kernel bodies -----------------------------

def ffn_resident_kernel(x_ref, w1_ref, b1_ref, w2_ref, b2_ref, o_ref):
    """Full weights resident in VMEM; one grid step per row tile."""
    x = x_ref[...]
    h = jnp.dot(x, w1_ref[...], preferred_element_type=jnp.float32)
    h = jnp.maximum(h + b1_ref[...].astype(jnp.float32), 0.0)
    # TODO(synk): dropout is identity here (eval mode); training-mode dropout
    # would build a keep-mask via pltpu.prng_seed / pltpu.prng_random_bits.
    h = h.astype(x.dtype)  # keep bf16 callers on the fast MXU path
    y = jnp.dot(h, w2_ref[...], preferred_element_type=jnp.float32)
    o_ref[...] = (y + b2_ref[...].astype(jnp.float32)).astype(o_ref.dtype)


def ffn_chunked_kernel(x_ref, w1_ref, b1_ref, w2_ref, b2_ref, o_ref, acc_ref):
    """d_ff streamed in chunks (reduction axis k); f32 accumulator in VMEM."""
    k = pl.program_id(1)

    x = x_ref[...]
    h = jnp.dot(x, w1_ref[...], preferred_element_type=jnp.float32)
    h = jnp.maximum(h + b1_ref[...].astype(jnp.float32), 0.0)
    h = h.astype(x.dtype)
    contrib = jnp.dot(h, w2_ref[...], preferred_element_type=jnp.float32)

    @pl.when(k == 0)
    def _first():  # direct write: saves a zero-store + read-add pass
        acc_ref[...] = contrib

    @pl.when(k > 0)
    def _rest():
        acc_ref[...] += contrib

    @pl.when(k == pl.num_programs(1) - 1)
    def _finalize():
        o_ref[...] = (acc_ref[...] + b2_ref[...].astype(jnp.float32)).astype(o_ref.dtype)


# ----------------------------- wrapper -----------------------------

@functools.partial(jax.jit, static_argnames=("tm",))
def positionwise_feed_forward(x, w1, b1, w2, b2, *, tm=None):
    """x: (batch, seq, d_model).  w1: (d_model, d_ff) = W1_torch.T, b1: (d_ff,),
    w2: (d_ff, d_model) = W2_torch.T, b2: (d_model,)."""
    batch, seq, d_model = x.shape
    d_ff = w1.shape[1]
    M = batch * seq
    isz = jnp.dtype(x.dtype).itemsize
    sub = {4: 8, 2: 16, 1: 32}.get(isz, 8)

    # ---- Generation-aware VMEM budget (leave headroom below physical VMEM).
    try:
        vmem_cap = int(pltpu.get_tpu_info().vmem_capacity_bytes)
    except Exception:
        vmem_cap = 64 << 20  # conservative fallback
    if vmem_cap >= (96 << 20):           # v5e / v6e: 128 MiB physical
        vmem_budget = min(int(vmem_cap * 0.82), 106 << 20)
    else:                                # v7x: 64 MiB physical -> ~54 MiB budget
        vmem_budget = int(vmem_cap * 0.85)

    # ---- Row tile: roofline-driven default (hide weight DMA / keep MXU fed),
    # clamped for tiny inputs and kept a multiple of the sublane packing.
    if tm is None:
        tm = 1024 if (vmem_cap >= (96 << 20) and isz <= 2) else 512
    tm = max(sub, min(tm, _round_up(M, sub)))
    tm = _round_up(tm, sub)

    lane_ff = _round_up(d_ff, 128)
    lane_dm = _round_up(d_model, 128)

    def resident_bytes(tm_):
        return (
            2 * d_model * d_ff * isz                 # W1 + W2 (single-buffered)
            + 16 * (lane_ff + lane_dm) * isz         # b1 + b2 (lane/sublane padded)
            + 2 * 2 * tm_ * d_model * isz            # x tile + out tile, double-buffered
            + tm_ * d_ff * (4 + isz)                 # f32 hidden + cast copy (internal)
        )

    def chunked_bytes(tm_, tf_):
        return (
            2 * 2 * d_model * tf_ * isz              # W1 + W2 chunks, double-buffered
            + 2 * 16 * (_round_up(tf_, 128) + lane_dm) * isz
            + 2 * 2 * tm_ * d_model * isz            # x tile + out tile
            + tm_ * tf_ * (4 + isz)                  # f32 hidden + cast copy
            + tm_ * d_model * 4                      # f32 accumulator scratch
        )

    # ---- Pick (tm, tf): prefer full weight residency (tf=None); otherwise a
    # 256-aligned d_ff chunk (v6e/v7x MXU width); shrink tm as a last resort.
    tf = None
    while True:
        if resident_bytes(tm) <= vmem_budget:
            tf = None
            break
        tf = min(_round_up(d_ff, 256), 2048)
        while tf > 256 and chunked_bytes(tm, tf) > vmem_budget:
            tf -= 256
        if chunked_bytes(tm, tf) <= vmem_budget or tm <= sub:
            break
        tm = max(sub, _round_up(tm // 2, sub))

    M_pad = _round_up(M, tm)
    x2d = x.reshape(M, d_model)
    if M_pad != M:
        x2d = jnp.pad(x2d, ((0, M_pad - M), (0, 0)))

    flops = 4 * M * d_model * d_ff      # two matmuls: 2 * (2*M*d_model*d_ff)
    n_row_tiles = M_pad // tm
    b2_2d = b2.reshape(1, d_model)

    if tf is None:
        # -------- RESIDENT path: weights fetched from HBM once per call --------
        b1_2d = b1.reshape(1, d_ff)
        vmem_limit = int(min(vmem_budget, max(resident_bytes(tm) + (4 << 20), 16 << 20)))
        cost = pl.CostEstimate(
            flops=flops,
            transcendentals=0,
            bytes_accessed=int(
                (x2d.size + w1.size + b1.size + w2.size + b2.size
                 + M_pad * d_model) * isz),
        )
        out2d = pl.pallas_call(
            ffn_resident_kernel,
            out_shape=jax.ShapeDtypeStruct((M_pad, d_model), x.dtype),
            grid_spec=pltpu.PrefetchScalarGridSpec(
                num_scalar_prefetch=0,
                grid=(n_row_tiles,),
                in_specs=[
                    pl.BlockSpec((tm, d_model), lambda i: (i, 0)),        # x rows
                    _resident_block_spec((d_model, d_ff), lambda i: (0, 0)),  # W1
                    _resident_block_spec((1, d_ff), lambda i: (0, 0)),        # b1
                    _resident_block_spec((d_ff, d_model), lambda i: (0, 0)),  # W2
                    _resident_block_spec((1, d_model), lambda i: (0, 0)),     # b2
                ],
                out_specs=pl.BlockSpec((tm, d_model), lambda i: (i, 0)),
            ),
            compiler_params=pltpu.CompilerParams(
                dimension_semantics=("parallel",),
                vmem_limit_bytes=vmem_limit,
            ),
            cost_estimate=cost,
        )(x2d, w1, b1_2d, w2, b2_2d)
    else:
        # -------- CHUNKED fallback: stream d_ff in 256-aligned chunks ----------
        d_ff_pad = _round_up(d_ff, tf)
        if d_ff_pad != d_ff:
            # TODO(synk): for repeated inference calls this padding should be a
            # one-time parameter-prep step hoisted out of the forward.
            w1p = jnp.pad(w1, ((0, 0), (0, d_ff_pad - d_ff)))
            b1p = jnp.pad(b1, ((0, d_ff_pad - d_ff),))
            w2p = jnp.pad(w2, ((0, d_ff_pad - d_ff), (0, 0)))
        else:
            w1p, b1p, w2p = w1, b1, w2
        b1_2d = b1p.reshape(1, d_ff_pad)
        vmem_limit = int(min(vmem_budget, max(chunked_bytes(tm, tf) + (4 << 20), 16 << 20)))
        cost = pl.CostEstimate(
            flops=flops,
            transcendentals=0,
            # Weights are re-streamed once per row tile on this path.
            bytes_accessed=int(
                (x2d.size + n_row_tiles * (w1p.size + w2p.size)
                 + b1_2d.size + b2_2d.size + M_pad * d_model) * isz),
        )
        out2d = pl.pallas_call(
            ffn_chunked_kernel,
            out_shape=jax.ShapeDtypeStruct((M_pad, d_model), x.dtype),
            grid_spec=pltpu.PrefetchScalarGridSpec(
                num_scalar_prefetch=0,
                grid=(n_row_tiles, d_ff_pad // tf),
                in_specs=[
                    pl.BlockSpec((tm, d_model), lambda i, k: (i, 0)),   # x rows
                    pl.BlockSpec((d_model, tf), lambda i, k: (0, k)),   # W1 column chunk
                    pl.BlockSpec((1, tf), lambda i, k: (0, k)),         # b1 chunk
                    pl.BlockSpec((tf, d_model), lambda i, k: (k, 0)),   # W2 row chunk
                    pl.BlockSpec((1, d_model), lambda i, k: (0, 0)),    # b2 (resident)
                ],
                out_specs=pl.BlockSpec((tm, d_model), lambda i, k: (i, 0)),
                scratch_shapes=[pltpu.VMEM((tm, d_model), jnp.float32)],
            ),
            compiler_params=pltpu.CompilerParams(
                dimension_semantics=("parallel", "arbitrary"),
                vmem_limit_bytes=vmem_limit,
            ),
            cost_estimate=cost,
        )(x2d, w1p, b1_2d, w2p, b2_2d)

    return out2d[:M].reshape(batch, seq, d_model)


if __name__ == "__main__":
    # Small shapes consistent with the module: (batch, seq, d_model) input.
    batch, seq, d_model, d_ff = 2, 8, 32, 64

    key = jax.random.PRNGKey(0)
    kx, k1, kb1, k2, kb2 = jax.random.split(key, 5)

    x = jax.random.normal(kx, (batch, seq, d_model), dtype=jnp.float32)

    # Deterministic parameter init mimicking nn.Linear's uniform(-1/sqrt(fan_in), .).
    # Stored pre-transposed: w1 is (d_model, d_ff) == W1_pytorch.T, etc.
    bound1 = 1.0 / (d_model ** 0.5)
    w1 = jax.random.uniform(k1, (d_model, d_ff), jnp.float32, -bound1, bound1)
    b1 = jax.random.uniform(kb1, (d_ff,), jnp.float32, -bound1, bound1)
    bound2 = 1.0 / (d_ff ** 0.5)
    w2 = jax.random.uniform(k2, (d_ff, d_model), jnp.float32, -bound2, bound2)
    b2 = jax.random.uniform(kb2, (d_model,), jnp.float32, -bound2, bound2)

    out = positionwise_feed_forward(x, w1, b1, w2, b2)
    out = jax.block_until_ready(out)

    # Pure-JAX reference check (dropout == identity in eval mode).
    ref = jnp.maximum(x @ w1 + b1, 0.0) @ w2 + b2
    assert out.shape == (batch, seq, d_model)
    assert jnp.allclose(out, ref, atol=1e-5, rtol=1e-5)

    print("KERNEL_OK")
</pallas_src>

<mosaic_0001>
module attributes {stable_mosaic.version = 11 : i64} {
  func.func @ffn_resident_kernel(%arg0: i32, %arg1: memref<16x32xf32, #tpu.memory_space<vmem>>, %arg2: memref<32x64xf32, #tpu.memory_space<vmem>>, %arg3: memref<1x64xf32, #tpu.memory_space<vmem>>, %arg4: memref<64x32xf32, #tpu.memory_space<vmem>>, %arg5: memref<1x32xf32, #tpu.memory_space<vmem>>, %arg6: memref<16x32xf32, #tpu.memory_space<vmem>>) attributes {dimension_semantics = [#tpu.dimension_semantics<parallel>], iteration_bounds = array<i64: 1>, scalar_prefetch = 0 : i64, scratch_operands = 0 : i64, tpu.core_type = #tpu.core_type<tc>, window_params = [{transform_indices = @transform_0, window_bounds = array<i64: 16, 32>}, {pipeline_mode = #tpu.pipeline_mode<synchronous>, transform_indices = @transform_1, window_bounds = array<i64: 32, 64>}, {pipeline_mode = #tpu.pipeline_mode<synchronous>, transform_indices = @transform_2, window_bounds = array<i64: 1, 64>}, {pipeline_mode = #tpu.pipeline_mode<synchronous>, transform_indices = @transform_3, window_bounds = array<i64: 64, 32>}, {pipeline_mode = #tpu.pipeline_mode<synchronous>, transform_indices = @transform_4, window_bounds = array<i64: 1, 32>}, {transform_indices = @transform_5, window_bounds = array<i64: 16, 32>}]} {
    %c0 = arith.constant 0 : index
    %c0_0 = arith.constant 0 : index
    %0 = vector.load %arg1[%c0, %c0_0] : memref<16x32xf32, #tpu.memory_space<vmem>>, vector<16x32xf32>
    %c0_1 = arith.constant 0 : index
    %c0_2 = arith.constant 0 : index
    %1 = vector.load %arg2[%c0_1, %c0_2] : memref<32x64xf32, #tpu.memory_space<vmem>>, vector<32x64xf32>
    %cst = arith.constant dense<0.000000e+00> : vector<16x64xf32>
    %2 = tpu.matmul %0, %1, %cst {dimension_numbers = #tpu.dot_dimension_numbers<[1], [0], [0], [1], [0, 0, 1, 1], [], []>} : vector<16x32xf32>, vector<32x64xf32>, vector<16x64xf32> -> vector<16x64xf32>
    %c0_3 = arith.constant 0 : index
    %c0_4 = arith.constant 0 : index
    %3 = vector.load %arg3[%c0_3, %c0_4] : memref<1x64xf32, #tpu.memory_space<vmem>>, vector<1x64xf32>
    %4 = vector.broadcast %3 : vector<1x64xf32> to vector<16x64xf32>
    %5 = arith.addf %2, %4 : vector<16x64xf32>
    %cst_5 = arith.constant 0.000000e+00 : f32
    %6 = vector.broadcast %cst_5 : f32 to vector<16x64xf32>
    %7 = arith.maximumf %5, %6 : vector<16x64xf32>
    %c0_6 = arith.constant 0 : index
    %c0_7 = arith.constant 0 : index
    %8 = vector.load %arg4[%c0_6, %c0_7] : memref<64x32xf32, #tpu.memory_space<vmem>>, vector<64x32xf32>
    %cst_8 = arith.constant dense<0.000000e+00> : vector<16x32xf32>
    %9 = tpu.matmul %7, %8, %cst_8 {dimension_numbers = #tpu.dot_dimension_numbers<[1], [0], [0], [1], [0, 0, 1, 1], [], []>} : vector<16x64xf32>, vector<64x32xf32>, vector<16x32xf32> -> vector<16x32xf32>
    %c0_9 = arith.constant 0 : index
    %c0_10 = arith.constant 0 : index
    %10 = vector.load %arg5[%c0_9, %c0_10] : memref<1x32xf32, #tpu.memory_space<vmem>>, vector<1x32xf32>
    %11 = vector.broadcast %10 : vector<1x32xf32> to vector<16x32xf32>
    %12 = arith.addf %9, %11 : vector<16x32xf32>
    %c0_11 = arith.constant 0 : index
    %c0_12 = arith.constant 0 : index
    %13 = vector.load %arg6[%c0_11, %c0_12] : memref<16x32xf32, #tpu.memory_space<vmem>>, vector<16x32xf32>
    tpu.vector_store %arg6[%c0_11, %c0_12], %12 {strides = array<i32>} : memref<16x32xf32, #tpu.memory_space<vmem>>, vector<16x32xf32>,
    return
  }
  func.func @transform_0(%arg0: i32) -> (i32, i32) {
    %c0_i32 = arith.constant 0 : i32
    %c0_i32_0 = arith.constant 0 : i32
    return %arg0, %c0_i32 : i32, i32
  }
  func.func @transform_1(%arg0: i32) -> (i32, i32) {
    %c0_i32 = arith.constant 0 : i32
    %c0_i32_0 = arith.constant 0 : i32
    %c0_i32_1 = arith.constant 0 : i32
    return %c0_i32, %c0_i32_0 : i32, i32
  }
  func.func @transform_2(%arg0: i32) -> (i32, i32) {
    %c0_i32 = arith.constant 0 : i32
    %c0_i32_0 = arith.constant 0 : i32
    %c0_i32_1 = arith.constant 0 : i32
    return %c0_i32, %c0_i32_0 : i32, i32
  }
  func.func @transform_3(%arg0: i32) -> (i32, i32) {
    %c0_i32 = arith.constant 0 : i32
    %c0_i32_0 = arith.constant 0 : i32
    %c0_i32_1 = arith.constant 0 : i32
    return %c0_i32, %c0_i32_0 : i32, i32
  }
  func.func @transform_4(%arg0: i32) -> (i32, i32) {
    %c0_i32 = arith.constant 0 : i32
    %c0_i32_0 = arith.constant 0 : i32
    %c0_i32_1 = arith.constant 0 : i32
    return %c0_i32, %c0_i32_0 : i32, i32
  }
  func.func @transform_5(%arg0: i32) -> (i32, i32) {
    %c0_i32 = arith.constant 0 : i32
    %c0_i32_0 = arith.constant 0 : i32
    return %arg0, %c0_i32 : i32, i32
  }
}

</mosaic_0001>

<bundles_post_ra>
// kernel: positionwise_feed_forward.1
= control target key start
LH: loop header
LB: loop body
LE: loop exit
PB: predicated region body
PF: predicated region fallthrough
CT: control target
= control target key end

     0   :  { %vm34_vm0 = vcmask 261120   ;;  %s433_s0 = inlined_call_operand.vmem [shape: f32[16,32], index: 0, kind: input, shape index: {}]   ;;  %s434_s1 = inlined_call_operand.vmem [shape: f32[32,64], index: 1, kind: input, shape index: {}]   ;;  %s435_s2 = inlined_call_operand.vmem [shape: f32[1,64], index: 2, kind: input, shape index: {}]   ;;  %s436_s3 = inlined_call_operand.vmem [shape: f32[64,32], index: 3, kind: input, shape index: {}]   ;;  %s437_s4 = inlined_call_operand.vmem [shape: f32[1,32], index: 4, kind: input, shape index: {}]   ;;  %s438_s5 = inlined_call_operand.hbm [shape: f32[16,32], index: 5, kind: output, shape index: {}]  }
   0x1   :  { %v23_v0 = vld [vmem:[%s434_s1] sm:$0xff]  ;;  %v24_v1 = vld [vmem:[%s434_s1 + $0x8] sm:$0xff]  ;;  %v25_v2 = vld [vmem:[%s434_s1 + $0x10] sm:$0xff] }
   0x2   :  { %v285_v3 = vpack.c.bf16 %v24_v1, %v23_v0  ;;  %v26_v4 = vld [vmem:[%s434_s1 + $0x18] sm:$0xff]  ;;  %v21_v5 = vld [vmem:[%s433_s0] sm:$0xff]  ;;  %v119_v8 = vld [vmem:[%s436_s3 + $0x8] sm:$0xff] }
   0x3   :  { %v289_v6 = vpack.c.bf16 %v26_v4, %v25_v2  ;;  %263 = vmatprep.mubr.msk.f32.mxu0 %vm34_vm0, %v21_v5  ;;  %v118_v7 = vld [vmem:[%s436_s3] sm:$0xff]  ;;  %v120_v9 = vld [vmem:[%s436_s3 + $0x10] sm:$0xff]  ;;  %v121_v11 = vld [vmem:[%s436_s3 + $0x18] sm:$0xff] }
   0x4   :  { %286 = vmatprep.subr.bf16.mxu0 %v285_v3  ;;  %v293_v10 = vpack.c.bf16 %v119_v8, %v118_v7  ;;  %v297_v12 = vpack.c.bf16 %v121_v11, %v120_v9  ;;  %v122_v13 = vld [vmem:[%s436_s3 + $0x20] sm:$0xff]  ;;  %v123_v14 = vld [vmem:[%s436_s3 + $0x28] sm:$0xff] }
   0x5   :  { %288 = vmatpush3.bf16.msra.mxu0 %v285_v3 }
   0x6   :  { %10 = vsyncpa [#allocation3], 0  ;;  %290 = vmatprep.subr.bf16.mxu0 %v289_v6  ;;  %294 = vmatprep.subr.bf16.mxu1 %v293_v10  ;;  %v301_v15 = vpack.c.bf16 %v123_v14, %v122_v13  ;;  %v22_v16 = vld [vmem:[%s433_s0 + $0x8] sm:$0xff]  ;;  %v124_v17 = vld [vmem:[%s436_s3 + $0x30] sm:$0xff]  ;;  %vm133_vm1 = vcmask 523264  }
   0x7   :  { %296 = vmatpush3.bf16.msra.mxu1 %v293_v10  ;;  %v125_v18 = vld [vmem:[%s436_s3 + $0x38] sm:$0xff]  ;;  %v233_v20 = vld [vmem:[%s435_s2] ss:$0 sm:$0xff]  ;;  %s336_s3 = smov [#allocation2]  }
   0x8   :  { %298 = vmatprep.subr.bf16.mxu1 %v297_v12  ;;  %v305_v19 = vpack.c.bf16 %v125_v18, %v124_v17  ;;  %v236_v27 = vld [vmem:[%s437_s4] ss:$0 sm:$0xff]  ;;  %s222_s23 = sshll.u32 %s336_s3, 4  ;;  %s223_s23 = int_to_ptr.vmem [resolvable:$true] %s222_s23 }
   0x9   :  { %292 = vmatpush3.bf16.msra.mxu0 %v289_v6  ;;  %s312_s2 = scalar_lea.vmem %s223_s23, 256  ;;  %p317_p1 = scmp.lt.s32.totalorder %s223_s23, %s223_s23 }
   0xa   :  { %p313_p0 = scmp.ne.s32.totalorder %s223_s23, %s312_s2  ;;  %p318_p2 = scmp.lt.s32.totalorder %s312_s2, %s312_s2 }
   0xb   :  { %300 = vmatpush3.bf16.msra.mxu1 %v297_v12 }
   0xc   :  { %264 = vmatmul.mubr.msk.f32.vlgmr.msra.gmra.mrb[0].mxu0 %vm34_vm0, %v22_v16  ;;  %302 = vmatprep.subr.bf16.mxu1 %v301_v15  ;;  %p319_p3 = por %p318_p2, %p317_p1 }
   0xe   :  { %p320_p4 = pnand %p319_p3, %p313_p0 }
   0xf   :  { %304 = vmatpush3.bf16.msra.mxu1 %v301_v15 }
  0x10   :  { %306 = vmatprep.subr.bf16.mxu1 %v305_v19 }
  0x13   :  { %308 = vmatpush3.bf16.msra.mxu1 %v305_v19 }
  0xdf   :  { %v265_v21 = vpop.f32.mrb[0].mxu0 }
  0xe0   :  { %v113_v22 = vadd.f32 %v265_v21, %v233_v20  ;;  %v107_v23 = vpop.f32.mrb[1].mxu0 }
  0xe1   :  { %v108_v24 = vadd.f32 %v233_v20, %v107_v23 }
  0xe2   :  { %v117_v26 = vmax.f32 %v113_v22, 0.0 }
  0xe3   :  { %v116_v25 = vmax.f32 %v108_v24, 0.0 }
  0xe5   :  { %282 = vmatprep.mubr.msk.f32.mxu1 %vm133_vm1, %v116_v25 }
  0xe6   :  { %283 = vmatmul.mubr.msk.f32.vlgmr.msra.gmra.mrb[0].mxu1 %vm133_vm1, %v117_v26 }
 0x1b9   :  { %v284_v28 = vpop.f32.mrb[0].mxu1 }
 0x1ba   :  { %v212_v29 = vadd.f32 %v284_v28, %v236_v27  ;;  %v206_v30 = vpop.f32.mrb[1].mxu1 }
 0x1bb   :  { %v207_v31 = vadd.f32 %v236_v27, %v206_v30 }
 0x1bc   :  { %216 = vst.msk [vmem:[#allocation2 + $0x8] sm:$0xff] %vm34_vm0, %v212_v29 }
 0x1bd   :  { %215 = vst.msk [vmem:[#allocation2] sm:$0xff] %vm34_vm0, %v207_v31 }
 0x1be   :  { %323 = shalt.err (!%p320_p4)
}
 0x1bf   :  { %s324_s25 = scalar_lea.hbm %s438_s5, 256 }
 0x1c0   :  { %p325_p5 = scmp.ne.s32.totalorder %s438_s5, %s324_s25  ;;  %p328_p6 = scmp.lt.u32.totalorder %s324_s25, %s438_s5 }
 0x1c2   :  { %p330_p7 = pnand %p328_p6, %p325_p5 }
 0x1c4   :  { %333 = shalt.err (!%p330_p7)
}
 0x1c5   :  { %s337_s30 = smov 128   ;;  %s338_s6 = smov 8  }
 0x1c6   :  { %228 = dma.vmem_to_hbm [thread:$0]  %s223_s23, 256, %s438_s5, [#allocation3], %s337_s30, %s337_s30, %s338_s6  }
 0x1c7   :  { %334 = dma.done.wait [#allocation3], 256  }
 0x1c8   :  { %335 = vsyncadd [#allocation3], 4294967040 }
 0x1c9   :  { %232 = vsyncpa [#allocation3], 1 }

</bundles_post_ra>
